<compile_context>
chip_gen: v5e
topology: v5e:2x2
jax: 0.10.0
libtpu: 0.0.40
codegen_flags: <defaults>
</compile_context>

<pallas_src>
import jax
import jax.numpy as jnp
from jax import lax
from jax.experimental import pallas as pl
from jax.experimental.pallas import tpu as pltpu


# ----------------------------------------------------------------------------
# Kernels
# ----------------------------------------------------------------------------
def _ce_loss_kernel(x_ref, wt_ref, b_ref, y_ref, loss_ref):
    # x_ref: (Bt, Dp) bf16   wt_ref: (Dp, Cp) bf16   b_ref: (1, Cp) f32
    # y_ref: (Bt, 1) i32     loss_ref: (1, Bt) f32 per-example loss (lane-dense)
    logits = jnp.dot(x_ref[...], wt_ref[...],
                     preferred_element_type=jnp.float32) + b_ref[...]     # (Bt, Cp) f32
    Bt, Cp = logits.shape

    # numerically-stable log-softmax on shifted logits (matches torch CE).
    m = jnp.max(logits, axis=-1, keepdims=True)                           # (Bt, 1)
    shifted = logits - m                                                  # (Bt, Cp)
    lse = jnp.log(jnp.sum(jnp.exp(shifted), axis=-1))                     # (Bt,)

    # fused one-hot gather: padded classes (bias -1e30, finite) are never
    # selected because labels are always < C.
    cls = lax.broadcasted_iota(jnp.int32, (Bt, Cp), 1)
    picked = jnp.sum(jnp.where(cls == y_ref[...], shifted, 0.0), axis=-1)  # (Bt,)

    loss_ref[...] = (lse - picked).reshape(1, Bt)                          # (1, Bt)


def _predict_kernel(x_ref, wt_ref, b_ref, pred_ref):
    # x_ref: (Bt, Dp) bf16  wt_ref: (Dp, Cp) bf16  b_ref: (1, Cp) f32
    # pred_ref: (1, Bt) i32 (lane-dense row)
    logits = jnp.dot(x_ref[...], wt_ref[...],
                     preferred_element_type=jnp.float32) + b_ref[...]     # (Bt, Cp)
    Bt, Cp = logits.shape

    # argmax over classes, first-max-index tie-breaking like torch.argmax(dim=1).
    # Padded classes sit at -1e30 so they can never be the max.
    m = jnp.max(logits, axis=-1, keepdims=True)                           # (Bt, 1)
    cls = lax.broadcasted_iota(jnp.int32, (Bt, Cp), 1)
    masked_idx = jnp.where(logits == m, cls, jnp.int32(Cp))               # (Bt, Cp)
    pred = jnp.min(masked_idx, axis=-1)                                   # (Bt,)

    pred_ref[...] = pred.reshape(1, Bt).astype(jnp.int32)                 # (1, Bt)


# ----------------------------------------------------------------------------
# Padding / tiling helpers
# ----------------------------------------------------------------------------
def _round_up(n, m):
    return ((n + m - 1) // m) * m


def _choose_batch_tile(B, Dp, Cp):
    """Pick (Bt, Bp): big tiles (toward 1024-2048 rows) bounded by VMEM, and
    >= 2 grid steps for big batches so the v7x megacore can split the batch."""
    Bmin = _round_up(B, 8)
    if Bmin <= 256:
        # one tile; block shape equals the full array so lane/sublane rules hold
        return Bmin, Bmin

    # per-row bytes: x (bf16, double-buffered) + out (f32, double-buffered)
    # + f32 logits/softmax temporaries (~4 copies of (Bt, Cp))
    row_bytes = 2 * Dp * 2 + 2 * 4 + 4 * Cp * 4
    resident = Dp * Cp * 2 + Cp * 4            # bf16 W (Buffered(1)) + f32 bias
    budget = 40 * 1024 * 1024 - resident       # stay well under v7x's 64 MiB
    bt = max(128, min(2048, budget // max(row_bytes, 1)))
    bt = min(bt, _round_up(pl.cdiv(Bmin, 2), 128))   # keep >= 2 grid steps
    bt = max(128, (bt // 128) * 128)                 # lane-dense output rows
    return bt, _round_up(B, bt)


def _prepare(x, wt, b):
    """bf16-cast + pad B/D/C. Pad copies are skipped when already aligned."""
    B, D = x.shape
    C = wt.shape[1]
    Dp = _round_up(D, 128)
    Cp = _round_up(C, 128)
    Bt, Bp = _choose_batch_tile(B, Dp, Cp)

    xb = x.astype(jnp.bfloat16)
    x_p = xb if (Bp, Dp) == (B, D) else (
        jnp.zeros((Bp, Dp), jnp.bfloat16).at[:B, :D].set(xb))

    wb = wt.astype(jnp.bfloat16)
    wt_p = wb if (Dp, Cp) == (D, C) else (
        jnp.zeros((Dp, Cp), jnp.bfloat16).at[:D, :C].set(wb))

    # padded class columns get a very negative (finite, f32) bias so max / LSE /
    # argmax are unaffected and exp() underflows to exactly 0 (no NaN).
    b_p = jnp.full((1, Cp), -1e30, jnp.float32).at[:, :C].set(
        jnp.asarray(b, jnp.float32).reshape(1, C))
    return x_p, wt_p, b_p, B, C, Bt, Bp, Dp, Cp


def _compiler_params(Bt, Dp, Cp):
    # real footprint: 2x streaming bf16 x tile + 1x bf16 W + f32 bias
    # + 2x lane-dense output row + f32 logits/softmax temporaries
    footprint = (2 * Bt * Dp * 2 + Dp * Cp * 2 + Cp * 4
                 + 2 * Bt * 4 + 4 * Bt * Cp * 4)
    limit = int(min(56 * 1024 * 1024, max(4 * 1024 * 1024, 2 * footprint)))
    return pltpu.CompilerParams(dimension_semantics=("parallel",),
                                vmem_limit_bytes=limit)


# ----------------------------------------------------------------------------
# Wrappers
# ----------------------------------------------------------------------------
def cross_entropy_loss(x, wt, b, y):
    """x:(B,D), wt:(D,C), b:(C,) or (1,C), y:(B,) int -> scalar f32 mean CE loss."""
    x_p, wt_p, b_p, B, C, Bt, Bp, Dp, Cp = _prepare(x, wt, b)
    y_p = jnp.zeros((Bp, 1), jnp.int32).at[:B, 0].set(y.astype(jnp.int32))

    per_example = pl.pallas_call(
        _ce_loss_kernel,
        out_shape=jax.ShapeDtypeStruct((1, Bp), jnp.float32),
        grid_spec=pltpu.PrefetchScalarGridSpec(
            num_scalar_prefetch=0,
            grid=(Bp // Bt,),
            in_specs=[
                pl.BlockSpec((Bt, Dp), lambda i: (i, 0)),                    # x tile
                pl.BlockSpec((Dp, Cp), lambda i: (0, 0),
                             pipeline_mode=pl.Buffered(1)),                  # Wt resident
                pl.BlockSpec((1, Cp), lambda i: (0, 0),
                             pipeline_mode=pl.Buffered(1)),                  # bias resident
                pl.BlockSpec((Bt, 1), lambda i: (i, 0)),                     # labels tile
            ],
            out_specs=pl.BlockSpec((1, Bt), lambda i: (0, i)),               # lane-dense row
        ),
        compiler_params=_compiler_params(Bt, Dp, Cp),
        cost_estimate=pl.CostEstimate(
            flops=2 * Bp * Dp * Cp,
            transcendentals=Bp * Cp,
            bytes_accessed=2 * (Bp * Dp + Dp * Cp) + 4 * (Cp + 2 * Bp),
        ),
    )(x_p, wt_p, b_p, y_p)

    # mean over the B real rows (padded rows sliced off); torch default = 'mean'
    return jnp.sum(per_example[0, :B]) / jnp.float32(B)


def predict(x, wt, b):
    """x:(B,D), wt:(D,C), b:(C,) or (1,C) -> (B,) int32 argmax predictions."""
    x_p, wt_p, b_p, B, C, Bt, Bp, Dp, Cp = _prepare(x, wt, b)

    pred = pl.pallas_call(
        _predict_kernel,
        out_shape=jax.ShapeDtypeStruct((1, Bp), jnp.int32),
        grid_spec=pltpu.PrefetchScalarGridSpec(
            num_scalar_prefetch=0,
            grid=(Bp // Bt,),
            in_specs=[
                pl.BlockSpec((Bt, Dp), lambda i: (i, 0)),                    # x tile
                pl.BlockSpec((Dp, Cp), lambda i: (0, 0),
                             pipeline_mode=pl.Buffered(1)),                  # Wt resident
                pl.BlockSpec((1, Cp), lambda i: (0, 0),
                             pipeline_mode=pl.Buffered(1)),                  # bias resident
            ],
            out_specs=pl.BlockSpec((1, Bt), lambda i: (0, i)),               # lane-dense row
        ),
        compiler_params=_compiler_params(Bt, Dp, Cp),
        cost_estimate=pl.CostEstimate(
            flops=2 * Bp * Dp * Cp,
            transcendentals=0,
            bytes_accessed=2 * (Bp * Dp + Dp * Cp) + 4 * (Cp + Bp),
        ),
    )(x_p, wt_p, b_p)

    return pred[0, :B]


# ----------------------------------------------------------------------------
# Main
# ----------------------------------------------------------------------------
if __name__ == "__main__":
    # Small shapes consistent with the module: Linear(input_size, num_classes)
    batch, input_size, num_classes = 8, 32, 5

    key = jax.random.PRNGKey(0)
    kx, kw, kb, ky = jax.random.split(key, 4)

    # Deterministic parameter init (mimic nn.Linear uniform(-1/sqrt(D), 1/sqrt(D)))
    bound = 1.0 / jnp.sqrt(jnp.float32(input_size))
    W = jax.random.uniform(kw, (num_classes, input_size), jnp.float32, -bound, bound)
    b = jax.random.uniform(kb, (num_classes,), jnp.float32, -bound, bound)
    Wt = W.T                                    # (D, C) for x @ Wt on the MXU

    x = jax.random.normal(kx, (batch, input_size), jnp.float32)
    y = jax.random.randint(ky, (batch,), 0, num_classes, dtype=jnp.int32)

    # Path 1: forward(x, y) -> scalar cross-entropy loss
    loss = cross_entropy_loss(x, Wt, b, y)
    # Path 2: forward(x) -> argmax predictions
    pred = predict(x, Wt, b)

    jax.block_until_ready((loss, pred))

    # Sanity check against a pure-JAX reference using the same bf16-rounded
    # operands the kernel feeds the MXU (f32 accumulation in both paths).
    xr = x.astype(jnp.bfloat16).astype(jnp.float32)
    wtr = Wt.astype(jnp.bfloat16).astype(jnp.float32)
    logits_ref = xr @ wtr + b.reshape(1, num_classes)
    lse_ref = jax.scipy.special.logsumexp(logits_ref, axis=-1)
    loss_ref = jnp.mean(lse_ref - logits_ref[jnp.arange(batch), y])
    pred_ref = jnp.argmax(logits_ref, axis=1).astype(jnp.int32)
    assert jnp.allclose(loss, loss_ref, atol=1e-4), (loss, loss_ref)
    assert jnp.array_equal(pred, pred_ref), (pred, pred_ref)

    print("KERNEL_OK")
</pallas_src>

<mosaic_0001>
module attributes {stable_mosaic.version = 11 : i64} {
  func.func @_ce_loss_kernel(%arg0: i32, %arg1: memref<8x128xbf16, #tpu.memory_space<vmem>>, %arg2: memref<128x128xbf16, #tpu.memory_space<vmem>>, %arg3: memref<1x128xf32, #tpu.memory_space<vmem>>, %arg4: memref<8x1xi32, #tpu.memory_space<vmem>>, %arg5: memref<1x8xf32, #tpu.memory_space<vmem>>) attributes {dimension_semantics = [#tpu.dimension_semantics<parallel>], iteration_bounds = array<i64: 1>, scalar_prefetch = 0 : i64, scratch_operands = 0 : i64, tpu.core_type = #tpu.core_type<tc>, window_params = [{transform_indices = @transform_0, window_bounds = array<i64: 8, 128>}, {pipeline_mode = #tpu.pipeline_mode<synchronous>, transform_indices = @transform_1, window_bounds = array<i64: 128, 128>}, {pipeline_mode = #tpu.pipeline_mode<synchronous>, transform_indices = @transform_2, window_bounds = array<i64: 1, 128>}, {transform_indices = @transform_3, window_bounds = array<i64: 8, 1>}, {transform_indices = @transform_4, window_bounds = array<i64: 1, 8>}]} {
    %c0 = arith.constant 0 : index
    %c0_0 = arith.constant 0 : index
    %0 = vector.load %arg1[%c0, %c0_0] : memref<8x128xbf16, #tpu.memory_space<vmem>>, vector<8x128xbf16>
    %c0_1 = arith.constant 0 : index
    %c0_2 = arith.constant 0 : index
    %1 = vector.load %arg2[%c0_1, %c0_2] : memref<128x128xbf16, #tpu.memory_space<vmem>>, vector<128x128xbf16>
    %cst = arith.constant dense<0.000000e+00> : vector<8x128xf32>
    %2 = tpu.matmul %0, %1, %cst {dimension_numbers = #tpu.dot_dimension_numbers<[1], [0], [0], [1], [0, 0, 1, 1], [], []>} : vector<8x128xbf16>, vector<128x128xbf16>, vector<8x128xf32> -> vector<8x128xf32>
    %c0_3 = arith.constant 0 : index
    %c0_4 = arith.constant 0 : index
    %3 = vector.load %arg3[%c0_3, %c0_4] : memref<1x128xf32, #tpu.memory_space<vmem>>, vector<1x128xf32>
    %4 = vector.broadcast %3 : vector<1x128xf32> to vector<8x128xf32>
    %5 = arith.addf %2, %4 : vector<8x128xf32>
    %cst_5 = arith.constant dense<0xFF800000> : vector<8xf32>
    %6 = vector.multi_reduction <maximumf>, %5, %cst_5 [1] : vector<8x128xf32> to vector<8xf32>
    %7 = vector.shape_cast %6 : vector<8xf32> to vector<8x1xf32>
    %8 = vector.broadcast %7 : vector<8x1xf32> to vector<8x128xf32>
    %9 = arith.subf %5, %8 : vector<8x128xf32>
    %10 = math.exp %9 : vector<8x128xf32>
    %cst_6 = arith.constant dense<0.000000e+00> : vector<8xf32>
    %11 = vector.multi_reduction <add>, %10, %cst_6 [1] : vector<8x128xf32> to vector<8xf32>
    %12 = math.log %11 : vector<8xf32>
    %13 = tpu.iota {dimensions = array<i32: 1>} : vector<8x128xi32>
    %c0_7 = arith.constant 0 : index
    %c0_8 = arith.constant 0 : index
    %14 = vector.load %arg4[%c0_7, %c0_8] : memref<8x1xi32, #tpu.memory_space<vmem>>, vector<8x1xi32>
    %15 = vector.broadcast %14 : vector<8x1xi32> to vector<8x128xi32>
    %16 = arith.cmpi eq, %13, %15 : vector<8x128xi32>
    %cst_9 = arith.constant 0.000000e+00 : f32
    %17 = vector.broadcast %cst_9 : f32 to vector<8x128xf32>
    %18 = arith.select %16, %9, %17 : vector<8x128xi1>, vector<8x128xf32>
    %cst_10 = arith.constant dense<0.000000e+00> : vector<8xf32>
    %19 = vector.multi_reduction <add>, %18, %cst_10 [1] : vector<8x128xf32> to vector<8xf32>
    %20 = arith.subf %12, %19 : vector<8xf32>
    %21 = vector.shape_cast %20 : vector<8xf32> to vector<1x8xf32>
    %c0_11 = arith.constant 0 : index
    %c0_12 = arith.constant 0 : index
    %22 = vector.load %arg5[%c0_11, %c0_12] : memref<1x8xf32, #tpu.memory_space<vmem>>, vector<1x8xf32>
    tpu.vector_store %arg5[%c0_11, %c0_12], %21 {strides = array<i32>} : memref<1x8xf32, #tpu.memory_space<vmem>>, vector<1x8xf32>,
    return
  }
  func.func @transform_0(%arg0: i32) -> (i32, i32) {
    %c0_i32 = arith.constant 0 : i32
    %c0_i32_0 = arith.constant 0 : i32
    return %arg0, %c0_i32 : i32, i32
  }
  func.func @transform_1(%arg0: i32) -> (i32, i32) {
    %c0_i32 = arith.constant 0 : i32
    %c0_i32_0 = arith.constant 0 : i32
    %c0_i32_1 = arith.constant 0 : i32
    return %c0_i32, %c0_i32_0 : i32, i32
  }
  func.func @transform_2(%arg0: i32) -> (i32, i32) {
    %c0_i32 = arith.constant 0 : i32
    %c0_i32_0 = arith.constant 0 : i32
    %c0_i32_1 = arith.constant 0 : i32
    return %c0_i32, %c0_i32_0 : i32, i32
  }
  func.func @transform_3(%arg0: i32) -> (i32, i32) {
    %c0_i32 = arith.constant 0 : i32
    %c0_i32_0 = arith.constant 0 : i32
    return %arg0, %c0_i32 : i32, i32
  }
  func.func @transform_4(%arg0: i32) -> (i32, i32) {
    %c0_i32 = arith.constant 0 : i32
    %c0_i32_0 = arith.constant 0 : i32
    return %c0_i32, %arg0 : i32, i32
  }
}

</mosaic_0001>

<bundles_post_ra>
// kernel: tpu_custom_call.1
= control target key start
LH: loop header
LB: loop body
LE: loop exit
PB: predicated region body
PF: predicated region fallthrough
CT: control target
= control target key end

     0   :  { %9 = vsyncpa [#allocation3], 0  ;;  %s306_s0 = inlined_call_operand.vmem [shape: bf16[8,128], index: 0, kind: input, shape index: {}]   ;;  %s307_s1 = inlined_call_operand.hbm [shape: bf16[128,128], index: 1, kind: input, shape index: {}]   ;;  %s308_s2 = inlined_call_operand.vmem [shape: f32[1,128], index: 2, kind: input, shape index: {}]   ;;  %s309_s3 = inlined_call_operand.vmem [shape: s32[8,1], index: 3, kind: input, shape index: {}]   ;;  %s310_s4 = inlined_call_operand.hbm [shape: f32[1,8], index: 4, kind: output, shape index: {}]  }
   0x1   :  { %10 = vsyncpa [#allocation4], 0  ;;  %s17_s17 = sshll.u32 %s307_s1, 4  ;;  %s261_s18 = smov [#allocation2]   ;;  %s18_s17 = int_to_ptr.hbm [resolvable:$true] %s17_s17 }
   0x2   :  { %s19_s19 = sshll.u32 %s261_s18, 4  ;;  %s262_s20 = smov 64   ;;  %s20_s19 = int_to_ptr.vmem [resolvable:$true] %s19_s19 }
   0x3   :  { %s263_s21 = smov 4  }
   0x4   :  { %25 = dma.hbm_to_vmem [thread:$0]  %s18_s17, 1024, %s20_s19, [#allocation3], %s262_s20, %s262_s20, %s263_s21  }
   0x5   :  { %257 = dma.done.wait [#allocation3], 1024  }
   0x6   :  { %258 = vsyncadd [#allocation3], 4294966272  ;;  %v197_v0 = vld [vmem:[#allocation2 + $0x38] sm:$0xff]  ;;  %v196_v1 = vld [vmem:[#allocation2 + $0x30] sm:$0xff]  ;;  %v264_v9 = vmov 0   ;;  %v125_v19 = vlaneseq  ;;  %s148_s28 = sshll.u32 %s310_s4, 4  ;;  %s149_s28 = int_to_ptr.hbm [resolvable:$true] %s148_s28 }
   0x7   :  { %103 = vmatpush.bf16.msra.mxu0 %v197_v0  ;;  %v195_v2 = vld [vmem:[#allocation2 + $0x28] sm:$0xff]  ;;  %v194_v3 = vld [vmem:[#allocation2 + $0x20] sm:$0xff]  ;;  %v193_v4 = vld [vmem:[#allocation2 + $0x18] sm:$0xff]  ;;  %203 = vset.pattern.permute.xlu0 %v264_v9  ;;  %vm139_vm1 = vcmask 57344  }
   0x8   :  { %v192_v5 = vld [vmem:[#allocation2 + $0x10] sm:$0xff]  ;;  %v191_v6 = vld [vmem:[#allocation2 + $0x8] sm:$0xff]  ;;  %v190_v7 = vld [vmem:[#allocation2] sm:$0xff]  ;;  %v126_v20 = vand.u32 127, %v125_v19 }
   0x9   :  { %v34_v8 = vld [vmem:[%s306_s0] sm:$0xf]  ;;  %s265_s0 = smov [#allocation5]  }
   0xa   :  { %v204_v10 = vld [vmem:[%s308_s2] ss:$0 sm:$0xff]  ;;  %s146_s2 = sshll.u32 %s265_s0, 4  ;;  %s147_s2 = int_to_ptr.vmem [resolvable:$true] %s146_s2 }
   0xb   :  { %104 = vmatpush.bf16.msra.mxu0 %v196_v1  ;;  %v127_v14 = vld [vmem:[%s309_s3] sm:$0xff] }
   0xf   :  { %105 = vmatpush.bf16.msra.mxu0 %v195_v2 }
  0x13   :  { %106 = vmatpush.bf16.msra.mxu0 %v194_v3 }
  0x17   :  { %107 = vmatpush.bf16.msra.mxu0 %v193_v4 }
  0x1b   :  { %108 = vmatpush.bf16.msra.mxu0 %v192_v5 }
  0x1f   :  { %109 = vmatpush.bf16.msra.mxu0 %v191_v6 }
  0x23   :  { %110 = vmatpush.bf16.msra.mxu0 %v190_v7 }
  0x26   :  { %111 = vmatmul.bf16.vlgmr.msra.gmra.mxu0 %v34_v8 }
  0xa3   :  { %v112_v11 = vpop.f32.mrf.mxu0 }
  0xa4   :  { %v113_v12 = vadd.f32 %v204_v10, %v112_v11 }
  0xa6   :  { %116 = vmax.xlane.f32.xlu0 %v113_v12 }
  0xab   :  { %v114_v13 = vpop.f32.mrf.mxu0 }
  0xba   :  { %129 = vperm.xlu0 %203, %v127_v14  }
 0x119   :  { %v117_v15 = vpop.xlane.xlu0 %116 }
 0x11a   :  { %v118_v16 = vsub.f32 %v113_v12, %v117_v15 }
 0x11c   :  { %v119_v17 = vmul.f32 1.442695, %v118_v16 }
 0x11e   :  { %205 = vpow2.f32 %v119_v17 }
 0x124   :  { %v206_v18 = vpop.eup %205 }
 0x125   :  { %121 = vadd.xlane.f32.xlu1 %v206_v18 }
 0x12c   :  { %v130_v21 = vpop.permute.xlu0 %129 }
 0x12d   :  { %vm131_vm0 = vcmp.eq.s32.totalorder %v126_v20, %v130_v21 }
 0x12e   :  { %v132_v22 = vsel %vm131_vm0, %v118_v16, 0.0 }
 0x12f   :  { %133 = vadd.xlane.f32.xlu1 %v132_v22 }
 0x198   :  { %v122_v23 = vpop.xlane.xlu1 %121 }
 0x199   :  { %207 = vlog2.f32 %v122_v23 }
 0x19f   :  { %v208_v24 = vpop.eup %207 }
 0x1a0   :  { %v124_v25 = vmul.f32 0.6931472, %v208_v24 }
 0x1a2   :  { %v134_v26 = vpop.xlane.xlu1 %133 }
 0x1a3   :  { %v135_v27 = vsub.f32 %v124_v25, %v134_v26 }
 0x1a5   :  { %v137_v28 = vperm.slane %v135_v27, %v126_v20 }
 0x1a7   :  { %140 = vst.msk [vmem:[#allocation5] sm:$0x1] %vm139_vm1, %v137_v28 }
 0x1a8   :  { %151 = dma.vmem_to_hbm [thread:$0]  %s147_s2, 16, %s149_s28, [#allocation4]  }
 0x1a9   :  { %259 = dma.done.wait [#allocation4], 16  }
 0x1aa   :  { %260 = vsyncadd [#allocation4], 4294967280 }
 0x1ab   :  { %156 = vsyncpa [#allocation3], 1 }
 0x1ac   :  { %157 = vsyncpa [#allocation4], 1 }

</bundles_post_ra>
